<compile_context>
chip_gen: v7x
topology: tpu7x:2x2x1
jax: 0.10.0
libtpu: 0.0.40
codegen_flags: <defaults>
</compile_context>

<pallas_src>
import math

import jax
import jax.numpy as jnp
from jax.experimental import pallas as pl
from jax.experimental.pallas import tpu as pltpu


def _round_up(x, m):
    return (x + m - 1) // m * m


def _gcn_body(x_ref, adj_ref, w_ref, b_ref, out_ref, acc_ref):
    # x_ref:   [TK, F_in]        (rows of the current k-tile)
    # adj_ref: [TM, TK]
    # w_ref:   [F_in, F_out_pad] (VMEM-resident across the grid)
    # b_ref:   [1, F_out_pad] or None
    # out_ref: [TM, F_out_pad]
    # acc_ref: [TM, F_out_pad]   f32 accumulator (scratch)
    k = pl.program_id(2)

    @pl.when(k == 0)
    def _init():
        acc_ref[...] = jnp.zeros_like(acc_ref)

    # First GEMM: support tile for this k-slab of rows (f32 accumulate).
    support = jnp.dot(x_ref[...], w_ref[...], preferred_element_type=jnp.float32)
    # Keep the second matmul on the fast MXU path in bf16 deployments
    # (no-op cast for f32 inputs).
    support = support.astype(w_ref.dtype)

    # Second GEMM: accumulate adj_tile @ support_tile in f32.
    acc_ref[...] += jnp.dot(adj_ref[...], support,
                            preferred_element_type=jnp.float32)

    @pl.when(k == pl.num_programs(2) - 1)
    def _finalize():
        acc = acc_ref[...]
        if b_ref is not None:
            acc = acc + b_ref[...]
        out_ref[...] = acc.astype(out_ref.dtype)


def _gcn_kernel_bias(x_ref, adj_ref, w_ref, b_ref, out_ref, acc_ref):
    _gcn_body(x_ref, adj_ref, w_ref, b_ref, out_ref, acc_ref)


def _gcn_kernel_nobias(x_ref, adj_ref, w_ref, out_ref, acc_ref):
    _gcn_body(x_ref, adj_ref, w_ref, None, out_ref, acc_ref)


def graph_convolution_forward(x, adj, weight, bias=None, *, tile=512,
                              compute_dtype=None):
    """Pallas GCN forward.

    x:      [B, N, F_in]  (or [N, F_in])
    adj:    [B, N, N]     (or [N, N])
    weight: [F_in, F_out]
    bias:   [F_out] or None
    tile:   row/k tile size for large graphs (multiple of 128)
    compute_dtype: optional dtype (e.g. jnp.bfloat16) for the matmul operands;
                   accumulation stays f32, output keeps the input dtype.
    returns [B, N, F_out] (or [N, F_out] for 2-D inputs)
    """
    squeeze = x.ndim == 2
    if squeeze:                           # un-batched usage, same as torch.matmul 2-D
        x = x[None]
        adj = adj[None]

    B, N, F_in = x.shape
    F_out = weight.shape[1]
    out_dtype = x.dtype

    if compute_dtype is not None:
        x = x.astype(compute_dtype)
        adj = adj.astype(compute_dtype)
        weight = weight.astype(compute_dtype)

    # Lane-dense output: pad F_out to a multiple of 128 (unmasked vst, full MXU N).
    F_out_pad = _round_up(F_out, 128)
    if F_out_pad != F_out:
        weight = jnp.pad(weight, ((0, 0), (0, F_out_pad - F_out)))

    # Tile N when the graph is large; small graphs use a single full-size block.
    if N <= tile:
        tm = tk = N
        N_pad = N
    else:
        assert tile % 128 == 0, "tile must be a multiple of 128"
        tm = tk = tile
        N_pad = _round_up(N, tile)
    if N_pad != N:
        x = jnp.pad(x, ((0, 0), (0, N_pad - N), (0, 0)))
        adj = jnp.pad(adj, ((0, 0), (0, N_pad - N), (0, N_pad - N)))

    has_bias = bias is not None
    operands = [x, adj, weight]
    in_specs = [
        # x rows of the current k-tile.
        pl.BlockSpec((pl.Squeezed(), tk, F_in), lambda b, i, k: (b, k, 0)),
        # adjacency tile.
        pl.BlockSpec((pl.Squeezed(), tm, tk), lambda b, i, k: (b, i, k)),
        # Same block index every step -> weight stays resident in VMEM.
        pl.BlockSpec((F_in, F_out_pad), lambda b, i, k: (0, 0)),
    ]
    if has_bias:
        bias2d = bias.astype(jnp.float32).reshape(1, F_out)
        if F_out_pad != F_out:
            bias2d = jnp.pad(bias2d, ((0, 0), (0, F_out_pad - F_out)))
        operands.append(bias2d)
        in_specs.append(pl.BlockSpec((1, F_out_pad), lambda b, i, k: (0, 0)))

    kernel = _gcn_kernel_bias if has_bias else _gcn_kernel_nobias

    grid = (B, N_pad // tm, N_pad // tk)

    out = pl.pallas_call(
        kernel,
        out_shape=jax.ShapeDtypeStruct((B, N_pad, F_out_pad), out_dtype),
        grid_spec=pltpu.PrefetchScalarGridSpec(
            num_scalar_prefetch=0,
            grid=grid,
            in_specs=in_specs,
            out_specs=pl.BlockSpec((pl.Squeezed(), tm, F_out_pad),
                                   lambda b, i, k: (b, i, 0)),
            scratch_shapes=[pltpu.VMEM((tm, F_out_pad), jnp.float32)],
        ),
        compiler_params=pltpu.CompilerParams(
            dimension_semantics=("parallel", "parallel", "arbitrary"),
            vmem_limit_bytes=32 * 1024 * 1024,
        ),
    )(*operands)

    out = out[:, :N, :F_out]
    return out[0] if squeeze else out


def graph_convolution_reference(x, adj, weight, bias=None):
    """Pure-JAX reference mirroring the PyTorch forward."""
    support = jnp.matmul(x, weight)
    out = jnp.matmul(adj, support)
    if bias is not None:
        out = out + bias
    return out


if __name__ == "__main__":
    # Small, module-consistent shapes: batch of graphs, N nodes, F_in -> F_out.
    B, N, F_in, F_out = 2, 16, 32, 64

    key = jax.random.PRNGKey(0)
    k_w, k_b, k_x, k_a = jax.random.split(key, 4)

    # PyTorch reset_parameters(): uniform(-stdv, stdv), stdv = 1/sqrt(out_features)
    stdv = 1.0 / math.sqrt(F_out)
    weight = jax.random.uniform(k_w, (F_in, F_out), jnp.float32, -stdv, stdv)
    bias = jax.random.uniform(k_b, (F_out,), jnp.float32, -stdv, stdv)

    x = jax.random.normal(k_x, (B, N, F_in), jnp.float32)
    # Row-normalized random adjacency (typical GCN input).
    a_raw = jax.random.uniform(k_a, (B, N, N), jnp.float32)
    adj = a_raw / jnp.sum(a_raw, axis=-1, keepdims=True)

    fwd = jax.jit(graph_convolution_forward,
                  static_argnames=("tile", "compute_dtype"))

    # 1) Main f32 path (small graph, single block per batch element).
    out = fwd(x, adj, weight, bias)
    jax.block_until_ready(out)
    out_ref = graph_convolution_reference(x, adj, weight, bias)
    assert out.shape == (B, N, F_out)
    assert jnp.allclose(out, out_ref, atol=1e-5, rtol=1e-5)

    # 2) Un-batched (2-D) path, matching torch.matmul 2-D semantics.
    out2d = fwd(x[0], adj[0], weight, bias)
    jax.block_until_ready(out2d)
    assert jnp.allclose(out2d,
                        graph_convolution_reference(x[0], adj[0], weight, bias),
                        atol=1e-5, rtol=1e-5)

    # 3) Bias-free kernel variant.
    out_nb = fwd(x, adj, weight, None)
    jax.block_until_ready(out_nb)
    assert jnp.allclose(out_nb, graph_convolution_reference(x, adj, weight, None),
                        atol=1e-5, rtol=1e-5)

    # 4) Tiled / accumulator path (N > tile): exercises grid (B, rows, k) + P3.
    N_big = 256
    kx2, ka2 = jax.random.split(jax.random.PRNGKey(1), 2)
    x_big = jax.random.normal(kx2, (B, N_big, F_in), jnp.float32)
    a_big = jax.random.uniform(ka2, (B, N_big, N_big), jnp.float32)
    adj_big = a_big / jnp.sum(a_big, axis=-1, keepdims=True)
    out_big = fwd(x_big, adj_big, weight, bias, tile=128)
    jax.block_until_ready(out_big)
    ref_big = graph_convolution_reference(x_big, adj_big, weight, bias)
    assert out_big.shape == (B, N_big, F_out)
    assert jnp.allclose(out_big, ref_big, atol=1e-4, rtol=1e-4)

    # 5) bf16 compute path (f32 accumulation), looser tolerance vs f32 reference.
    out_bf16 = fwd(x_big, adj_big, weight, bias, tile=128,
                   compute_dtype=jnp.bfloat16)
    jax.block_until_ready(out_bf16)
    assert out_bf16.dtype == jnp.float32
    assert jnp.allclose(out_bf16, ref_big, atol=1e-2, rtol=5e-2)

    print("KERNEL_OK")
</pallas_src>

<mosaic_0001>
module attributes {stable_mosaic.version = 11 : i64} {
  func.func @_gcn_kernel_bias(%arg0: i32, %arg1: i32, %arg2: i32, %arg3: memref<1x16x32xf32, #tpu.memory_space<vmem>>, %arg4: memref<1x16x16xf32, #tpu.memory_space<vmem>>, %arg5: memref<32x128xf32, #tpu.memory_space<vmem>>, %arg6: memref<1x128xf32, #tpu.memory_space<vmem>>, %arg7: memref<1x16x128xf32, #tpu.memory_space<vmem>>, %arg8: memref<16x128xf32, #tpu.memory_space<vmem>>) attributes {dimension_semantics = [#tpu.dimension_semantics<parallel>, #tpu.dimension_semantics<parallel>, #tpu.dimension_semantics<arbitrary>], iteration_bounds = array<i64: 2, 1, 1>, scalar_prefetch = 0 : i64, scratch_operands = 1 : i64, tpu.core_type = #tpu.core_type<tc>, window_params = [{transform_indices = @transform_0, window_bounds = array<i64: 1, 16, 32>}, {transform_indices = @transform_1, window_bounds = array<i64: 1, 16, 16>}, {pipeline_mode = #tpu.pipeline_mode<synchronous>, transform_indices = @transform_2, window_bounds = array<i64: 32, 128>}, {pipeline_mode = #tpu.pipeline_mode<synchronous>, transform_indices = @transform_3, window_bounds = array<i64: 1, 128>}, {transform_indices = @transform_4, window_bounds = array<i64: 1, 16, 128>}]} {
    %c0_i32 = arith.constant 0 : i32
    %0 = arith.cmpi eq, %arg2, %c0_i32 : i32
    %1 = arith.extui %0 : i1 to i32
    %c0_i32_0 = arith.constant 0 : i32
    %2 = arith.cmpi ne, %1, %c0_i32_0 : i32
    scf.if %2 {
      %cst_15 = arith.constant 0.000000e+00 : f32
      %16 = vector.broadcast %cst_15 : f32 to vector<16x128xf32>
      %c0_16 = arith.constant 0 : index
      %c0_17 = arith.constant 0 : index
      %17 = vector.load %arg8[%c0_16, %c0_17] : memref<16x128xf32, #tpu.memory_space<vmem>>, vector<16x128xf32>
      tpu.vector_store %arg8[%c0_16, %c0_17], %16 {strides = array<i32>} : memref<16x128xf32, #tpu.memory_space<vmem>>, vector<16x128xf32>,
    } else {
    }
    %c0 = arith.constant 0 : index
    %c0_1 = arith.constant 0 : index
    %c0_2 = arith.constant 0 : index
    %3 = vector.load %arg3[%c0, %c0_1, %c0_2] : memref<1x16x32xf32, #tpu.memory_space<vmem>>, vector<1x16x32xf32>
    %4 = vector.shape_cast %3 : vector<1x16x32xf32> to vector<16x32xf32>
    %c0_3 = arith.constant 0 : index
    %c0_4 = arith.constant 0 : index
    %5 = vector.load %arg5[%c0_3, %c0_4] : memref<32x128xf32, #tpu.memory_space<vmem>>, vector<32x128xf32>
    %cst = arith.constant dense<0.000000e+00> : vector<16x128xf32>
    %6 = tpu.matmul %4, %5, %cst {dimension_numbers = #tpu.dot_dimension_numbers<[1], [0], [0], [1], [0, 0, 1, 1], [], []>} : vector<16x32xf32>, vector<32x128xf32>, vector<16x128xf32> -> vector<16x128xf32>
    %c0_5 = arith.constant 0 : index
    %c0_6 = arith.constant 0 : index
    %7 = vector.load %arg8[%c0_5, %c0_6] : memref<16x128xf32, #tpu.memory_space<vmem>>, vector<16x128xf32>
    %c0_7 = arith.constant 0 : index
    %c0_8 = arith.constant 0 : index
    %c0_9 = arith.constant 0 : index
    %8 = vector.load %arg4[%c0_7, %c0_8, %c0_9] : memref<1x16x16xf32, #tpu.memory_space<vmem>>, vector<1x16x16xf32>
    %9 = vector.shape_cast %8 : vector<1x16x16xf32> to vector<16x16xf32>
    %cst_10 = arith.constant dense<0.000000e+00> : vector<16x128xf32>
    %10 = tpu.matmul %9, %6, %cst_10 {dimension_numbers = #tpu.dot_dimension_numbers<[1], [0], [0], [1], [0, 0, 1, 1], [], []>} : vector<16x16xf32>, vector<16x128xf32>, vector<16x128xf32> -> vector<16x128xf32>
    %11 = arith.addf %7, %10 : vector<16x128xf32>
    %c0_11 = arith.constant 0 : index
    %c0_12 = arith.constant 0 : index
    %12 = vector.load %arg8[%c0_11, %c0_12] : memref<16x128xf32, #tpu.memory_space<vmem>>, vector<16x128xf32>
    tpu.vector_store %arg8[%c0_11, %c0_12], %11 {strides = array<i32>} : memref<16x128xf32, #tpu.memory_space<vmem>>, vector<16x128xf32>,
    %c0_i32_13 = arith.constant 0 : i32
    %13 = arith.cmpi eq, %arg2, %c0_i32_13 : i32
    %14 = arith.extui %13 : i1 to i32
    %c0_i32_14 = arith.constant 0 : i32
    %15 = arith.cmpi ne, %14, %c0_i32_14 : i32
    scf.if %15 {
      %c0_15 = arith.constant 0 : index
      %c0_16 = arith.constant 0 : index
      %16 = vector.load %arg8[%c0_15, %c0_16] : memref<16x128xf32, #tpu.memory_space<vmem>>, vector<16x128xf32>
      %c0_17 = arith.constant 0 : index
      %c0_18 = arith.constant 0 : index
      %17 = vector.load %arg6[%c0_17, %c0_18] : memref<1x128xf32, #tpu.memory_space<vmem>>, vector<1x128xf32>
      %18 = vector.broadcast %17 : vector<1x128xf32> to vector<16x128xf32>
      %19 = arith.addf %16, %18 : vector<16x128xf32>
      %c0_19 = arith.constant 0 : index
      %c0_20 = arith.constant 0 : index
      %c0_21 = arith.constant 0 : index
      %20 = vector.load %arg7[%c0_19, %c0_20, %c0_21] : memref<1x16x128xf32, #tpu.memory_space<vmem>>, vector<1x16x128xf32>
      %21 = vector.shape_cast %20 : vector<1x16x128xf32> to vector<16x128xf32>
      %22 = vector.shape_cast %19 : vector<16x128xf32> to vector<1x16x128xf32>
      tpu.vector_store %arg7[%c0_19, %c0_20, %c0_21], %22 {strides = array<i32>} : memref<1x16x128xf32, #tpu.memory_space<vmem>>, vector<1x16x128xf32>,
    } else {
    }
    return
  }
  func.func @transform_0(%arg0: i32, %arg1: i32, %arg2: i32) -> (i32, i32, i32) {
    %c0_i32 = arith.constant 0 : i32
    %c0_i32_0 = arith.constant 0 : i32
    return %arg0, %arg2, %c0_i32 : i32, i32, i32
  }
  func.func @transform_1(%arg0: i32, %arg1: i32, %arg2: i32) -> (i32, i32, i32) {
    %c0_i32 = arith.constant 0 : i32
    return %arg0, %arg1, %arg2 : i32, i32, i32
  }
  func.func @transform_2(%arg0: i32, %arg1: i32, %arg2: i32) -> (i32, i32) {
    %c0_i32 = arith.constant 0 : i32
    %c0_i32_0 = arith.constant 0 : i32
    %c0_i32_1 = arith.constant 0 : i32
    return %c0_i32, %c0_i32_0 : i32, i32
  }
  func.func @transform_3(%arg0: i32, %arg1: i32, %arg2: i32) -> (i32, i32) {
    %c0_i32 = arith.constant 0 : i32
    %c0_i32_0 = arith.constant 0 : i32
    %c0_i32_1 = arith.constant 0 : i32
    return %c0_i32, %c0_i32_0 : i32, i32
  }
  func.func @transform_4(%arg0: i32, %arg1: i32, %arg2: i32) -> (i32, i32, i32) {
    %c0_i32 = arith.constant 0 : i32
    %c0_i32_0 = arith.constant 0 : i32
    return %arg0, %arg1, %c0_i32 : i32, i32, i32
  }
}

</mosaic_0001>

<bundles_post_ra>
// kernel: graph_convolution_forward.1
= control target key start
LH: loop header
LB: loop body
LE: loop exit
PB: predicated region body
PF: predicated region fallthrough
CT: control target
= control target key end

     0   :  { %9 = vsyncpa [#allocation4], 0  ;;  %s961_s0 = inlined_call_operand.vmem [shape: f32[2,16,32], index: 0, kind: input, shape index: {}]   ;;  %s962_s1 = inlined_call_operand.vmem [shape: f32[2,16,16], index: 1, kind: input, shape index: {}]   ;;  %s963_s2 = inlined_call_operand.vmem [shape: f32[32,128], index: 2, kind: input, shape index: {}]   ;;  %s964_s3 = inlined_call_operand.vmem [shape: f32[1,128], index: 3, kind: input, shape index: {}]   ;;  %s965_s4 = inlined_call_operand.hbm [shape: f32[2,16,128], index: 4, kind: output, shape index: {}]  }
   0x1   :  { %11 = vsyncpa [#allocation4 + $0x1], 0  ;;  %s828_s15 = smov 0   ;;  %s830_s16 = smov 0  }
   0x2   :  { %s832_s17 = smov 0   ;;  %s834_s18 = smov 0  }
   0x3   :  { %s836_s19 = smov 0   ;;  %s838_s20 = smov 0  }
   0x4 LB: > { %s600_s21 = sadd.s32 4294967295, %s798_s20   ;;  %s601_s22 = sadd.s32 4294967294, %s798_s20   ;;  %s798_s20 = sphi %s838_s20, %s17_s20   ;;  %s794_s19 = sphi %s836_s19, %s972_s19   ;;  %s790_s18 = sphi %s834_s18, %s971_s18   ;;  %s786_s17 = sphi %s832_s17, %s970_s17   ;;  %s782_s16 = sphi %s830_s16, %s969_s16   ;;  %s778_s15 = sphi %s828_s15, %s968_s15  }
   0x5   : > { %s36_s23 = sadd.s32 1, %s794_s19  ;;  %s145_s24 = sadd.s32 1, %s786_s17 }
   0x6   : > { %p38_p0 = scmp.ge.s32.totalorder %s36_s23, 2  ;;  %p155_p1 = scmp.ne.s32.totalorder %s786_s17, %s782_s16 }
   0x7   : > { %p156_p2 = scmp.eq.s32.totalorder %s600_s21, 1  ;;  %p161_p3 = scmp.ne.s32.totalorder %s782_s16, %s778_s15 }
   0x8   : > { %s974_s23 = smov (%p38_p0, %s36_s23), 0  ;;  %p162_p5 = scmp.eq.s32.totalorder %s601_s22, 1 }
   0x9   : > { %p868_p4 = por %p156_p2, %p155_p1  ;;  %s140_s26 = ssub.s32 %s794_s19, %s974_s23 }
   0xa   : > { %p604_p6 = scmp.ge.s32.totalorder %s798_s20, 1  ;;  %p143_p7 = scmp.eq.s32.totalorder %s140_s26, 0 }
   0xb   : > { %p875_p8 = por %p162_p5, %p161_p3  ;;  %p215_p9 = scmp.lt.s32.totalorder %s798_s20, 3 }
   0xc   : > { %s881_s28 = scalar_select %p143_p7, %s786_s17, %s145_s24  }
   0xd   : > { %p216_p10 = pnand %p604_p6, %p215_p9 }
   0xe   : > { %v289_v0 = vld [vmem:[%s963_s2] sm:$0xff] (!%p216_p10)  ;;  %v290_v1 = vld [vmem:[%s963_s2 + $0x8] sm:$0xff] (!%p216_p10)  ;;  %v291_v2 = vld [vmem:[%s963_s2 + $0x10] sm:$0xff] (!%p216_p10)  ;;  %p258_p11 = scmp.lt.s32.totalorder (!%p216_p10), %s790_s18, 1  ;;  %vm293_vm0 = vcmask (!%p216_p10), 261120   ;;  %vm379_vm1 = vcmask (!%p216_p10), 130048  }
   0xf   : > { %219 = sbr.rel (%p216_p10) target bundleno = 477 (0x1dd), region = 36  ;;  %v651_v3 = vpack.c.bf16 (!%p216_p10), %v290_v1, %v289_v0  ;;  %v292_v4 = vld [vmem:[%s963_s2 + $0x18] sm:$0xff] (!%p216_p10)  ;;  %s254_s29 = sand.u32 (!%p216_p10), 1, %s782_s16   ;;  %v614_v13 = vld [vmem:[%s964_s3] ss:$0 sm:$0xff] (!%p216_p10) }
  0x10   : > { %v655_v5 = vpack.c.bf16 (!%p216_p10), %v292_v4, %v291_v2  ;;  %s605_s30 = sshll.u32 (!%p216_p10), %s254_s29, 4  ;;  %s622_s9 = sshll.u32 (!%p216_p10), %s790_s18, 8 }
  0x11   : > { %652 = vmatprep.subr.bf16.mxu0 (!%p216_p10), %v651_v3  ;;  %s256_s7 = scalar_lea.vmem (!%p216_p10), [#allocation3], %s605_s30  ;;  %s915_s13 = scalar_lea.sflag (!%p216_p10), [#allocation4], %s254_s29 }
  0x12   : > { %654 = vmatpush3.bf16.msra.mxu0 (!%p216_p10), %v651_v3  ;;  %s497_s8 = sshll.u32 (!%p216_p10), %s256_s7, 4  ;;  %s908_s8 = int_to_ptr.vmem [resolvable:$true] %s497_s8 }
  0x13   : > { %656 = vmatprep.subr.bf16.mxu0 (!%p216_p10), %v655_v5  ;;  %s720_s14 = scalar_lea.vmem (!%p216_p10), %s908_s8, 256 }
  0x14   : > { %p721_p12 = scmp.ne.s32.totalorder (!%p216_p10), %s908_s8, %s720_s14 }
  0x16   : > { %s259_s11 = scalar_select %p258_p11, %s790_s18, 1  ;;  %658 = vmatpush3.bf16.msra.mxu0 %v655_v5 }
  0x17   : > { %p722_p13 = pnand %p721_p12, %p868_p4  ;;  %s800_s18 = smov [#allocation3]  }
  0x18   : > { %s620_s12 = sshll.u32 %s259_s11, 4 }
  0x19   : > { %s265_s21 = scalar_lea.vmem %s961_s0, %s620_s12  ;;  %s278_s26 = scalar_lea.vmem %s962_s1, %s620_s12 }
  0x1a   : > { %v287_v6 = vld [vmem:[%s265_s21] sm:$0xff]  ;;  %v288_v7 = vld [vmem:[%s265_s21 + $0x8] sm:$0xff]  ;;  %s913_s12 = scalar_lea.hbm %s965_s4, %s622_s9  ;;  %p723_p0 = pneg %p722_p13 }
  0x1b   : > { %641 = vmatprep.mubr.msk.f32.mxu0 %vm293_vm0, %v287_v6  ;;  %v377_v8 = vld [vmem:[%s278_s26] sm:$0xff]  ;;  %v378_v12 = vld [vmem:[%s278_s26 + $0x8] sm:$0xff]  ;;  %s724_s21 = sshll.u32 %s800_s18, 4  ;;  %s725_s21 = int_to_ptr.vmem [resolvable:$false] %s724_s21 }
  0x1c   : > { %642 = vmatmul.mubr.msk.f32.vlgmr.msra.gmra.mrb[0].mxu0 %vm293_vm0, %v288_v7  ;;  %648 = vmatprep.mubr.msk.f32.mxu1 %vm379_vm1, %v377_v8  ;;  %s726_s22 = scalar_lea.vmem %s725_s21, 512  ;;  %p727_p1 = scmp.lt.s32.totalorder %s908_s8, %s725_s21 }
  0x1d   : > { %p728_p2 = scmp.lt.s32.totalorder %s726_s22, %s720_s14 }
  0x1f   : > { %p729_p3 = por %p728_p2, %p727_p1 }
  0x21   : > { %p730_p5 = pnand %p729_p3, %p723_p0 }
  0xef   : > { %v643_v9 = vpop.f32.mrb[0].mxu0 }
  0xf0   : > { %v366_v10 = vpop.f32.mrb[1].mxu0 }
  0xf1   : > { %v659_v11 = vpack.c.bf16 %v643_v9, %v366_v10 }
  0xf3   : > { %660 = vmatprep.subr.bf16.mxu1 %v659_v11 }
  0xf4   : > { %662 = vmatpush3.bf16.msra.mxu1 %v659_v11 }
  0xf7   : > { %649 = vmatmul.mubr.msk.f32.vlgmr.msra.gmra.mrb[0].mxu1 %vm379_vm1, %v378_v12 }
 0x1ca   : > { %v650_v14 = vpop.f32.mrb[0].mxu1 }
 0x1cb   : > { %v478_v15 = vadd.f32 %v650_v14, %v614_v13  ;;  %v452_v16 = vpop.f32.mrb[1].mxu1 }
 0x1cc   : > { %v477_v17 = vadd.f32 %v614_v13, %v452_v16 }
 0x1cd   : > { %480 = vst [vmem:[%s256_s7 + $0x8] sm:$0xff] %v478_v15 }
 0x1ce   : > { %479 = vst [vmem:[%s256_s7] sm:$0xff] %v477_v17 }
 0x1cf   : > { %733 = shalt.err (!%p730_p5)
}
 0x1d0   : > { %s734_s24 = scalar_lea.hbm %s913_s12, 256  ;;  %s738_s30 = scalar_lea.hbm %s965_s4, 512 }
 0x1d1   : > { %p735_p6 = scmp.ne.s32.totalorder %s913_s12, %s734_s24  ;;  %p739_p10 = scmp.lt.u32.totalorder %s913_s12, %s965_s4 }
 0x1d2   : > { %p740_p11 = scmp.lt.u32.totalorder %s738_s30, %s734_s24  ;;  %p742_p13 = scmp.lt.u32.totalorder %s734_s24, %s913_s12 }
 0x1d3   : > { %p736_p7 = pnand %p735_p6, %p868_p4 }
 0x1d4   : > { %p741_p12 = por %p740_p11, %p739_p10 }
 0x1d5   : > { %p737_p9 = pneg %p736_p7 }
 0x1d6   : > { %p743_p0 = por %p742_p13, %p741_p12 }
 0x1d8   : > { %p744_p1 = pnand %p743_p0, %p737_p9 }
 0x1da   : > { %747 = shalt.err (!%p744_p1)
}
 0x1db   : > { %s801_s7 = smov 128   ;;  %s802_s9 = smov 8  }
 0x1dc   : > { %663 = dma.vmem_to_hbm [thread:$0]  (%p868_p4), %s908_s8, 256, %s913_s12, %s915_s13, %s801_s7, %s801_s7, %s802_s9  }
 0x1dd PF: > { %p669_p2 = scmp.ge.s32.totalorder %s798_s20, 2  ;;  %s512_s10 = sand.u32 1, %s778_s15  }
 0x1de   : > { %s513_s11 = scalar_lea.sflag [#allocation4], %s512_s10 }
 0x1df   : > { %p666_p3 = pnand %p669_p2, %p875_p8 }
 0x1e1   : > { %773 = dma.done.wait (!%p666_p3), %s513_s11, 256  }
 0x1e2   : > { %775 = vsyncadd (!%p666_p3), %s513_s11, 4294967040  ;;  %s17_s20 = sadd.s32 1, %s798_s20   ;;  %s968_s15 = smov %s782_s16 }
 0x1e3   : > { %p14_p5 = scmp.ge.s32.totalorder %s17_s20, 4   ;;  %s969_s16 = smov %s786_s17 }
 0x1e4   : > { %s970_s17 = smov %s881_s28  ;;  %s971_s18 = smov %s794_s19 }
 0x1e5   : > { %s972_s19 = smov %s974_s23  ;;  %16 = sbr.rel (!%p14_p5) target bundleno = 4 (0x4), region = 82 }
 0x1ec   :  { %518 = vsyncpa [#allocation4], 1 }
 0x1ed   :  { %520 = vsyncpa [#allocation4 + $0x1], 1 }

</bundles_post_ra>
